<compile_context>
chip_gen: v5e
topology: v5e:2x2
jax: 0.10.0
libtpu: 0.0.40
codegen_flags: <defaults>
</compile_context>

<pallas_src>
import functools

import jax
import jax.numpy as jnp
from jax.experimental import pallas as pl
from jax.experimental.pallas import tpu as pltpu

# ----- ResampleLoss hyper-parameters (from SentenceCriterion.__init__) -----
MAP_ALPHA = 0.1         # map_param.alpha
MAP_BETA = 10.0         # map_param.beta
MAP_GAMMA = 0.2         # map_param.gamma
NEG_SCALE = 2.0         # logit_reg.neg_scale
INIT_BIAS_SCALE = 0.05  # logit_reg.init_bias
FOCAL_GAMMA = 2         # focal.gamma (== 2 -> lowered as f*f below)
BALANCE_PARAM = 2.0     # focal.balance_param
LOSS_WEIGHT = 2.0       # loss_weight
COS_EPS = 1e-12         # clamp on squared norms (~ATen cosine_embedding_loss eps)


# ---------------------------------------------------------------------------
# Fused kernel: grid axis 0 runs over the K matched rows ("arbitrary",
# cosine loss accumulated in VMEM scratch); the ResampleLoss block is resident
# and evaluated once on the final step.
# ---------------------------------------------------------------------------
def _fused_loss_kernel(pred_idx_ref, tgt_idx_ref,       # scalar prefetch (SMEM)
                       pred_ref, tgt_ref,               # gathered rows (1,1,D)
                       logit_ref, label_ref,            # (bs, C) resident
                       finv_ref, bias_ref,              # (1, C) resident
                       losses_ref, sim_ref,             # (1, 1) outputs
                       acc_ref,                         # (1, 1) VMEM scratch
                       *, k_valid, num_cls_el):
    del pred_idx_ref, tgt_idx_ref                       # consumed by index_maps
    i = pl.program_id(0)

    @pl.when(i == 0)
    def _():
        acc_ref[...] = jnp.zeros_like(acc_ref)

    # ---- cosine-embedding loss (target == +1): one matched row per step ----
    p = pred_ref[0].astype(jnp.float32)                  # (1, D)
    t = tgt_ref[0].astype(jnp.float32)                   # (1, D)
    dot = jnp.sum(p * t, axis=-1, keepdims=True)         # (1, 1)
    n1 = jnp.maximum(jnp.sum(p * p, axis=-1, keepdims=True), COS_EPS)
    n2 = jnp.maximum(jnp.sum(t * t, axis=-1, keepdims=True), COS_EPS)
    cos = dot * jax.lax.rsqrt(n1) * jax.lax.rsqrt(n2)    # EUP rsqrt, overflow-safe
    acc_ref[...] += 1.0 - cos

    @pl.when(i == pl.num_programs(0) - 1)
    def _():
        sim = acc_ref[...] * (1.0 / float(k_valid))      # mean over K matched rows

        # ---- ResampleLoss(rebalance + logit_reg + focal BCE), evaluated once ----
        logits = logit_ref[...].astype(jnp.float32)      # (bs, C)
        label = label_ref[...].astype(jnp.float32)       # (bs, C)
        finv = finv_ref[...].astype(jnp.float32)         # (1, C)

        # rebalance_weight
        repeat_rate = jnp.sum(label * finv, axis=1, keepdims=True)        # (bs, 1)
        inv_rate = pl.reciprocal(jnp.maximum(repeat_rate, 1e-12), approx=True)
        pos_weight = finv * inv_rate                                      # (bs, C)
        weight = jax.nn.sigmoid(MAP_BETA * (pos_weight - MAP_GAMMA)) + MAP_ALPHA

        # logit_reg_functions
        logits = logits + bias_ref[...].astype(jnp.float32)
        logits = logits * (1.0 - label) * NEG_SCALE + logits * label
        weight = weight * (1.0 / NEG_SCALE) * (1.0 - label) + weight * label

        # focal-weighted BCE-with-logits (numerically stable form)
        bce = (jnp.maximum(logits, 0.0) - logits * label
               + jnp.log(1.0 + jnp.exp(-jnp.abs(logits))))
        pt = jnp.exp(-bce)                               # exp(logpt), logpt = -bce
        f = 1.0 - pt
        loss = f * f * (weight * bce)                    # gamma == 2 -> two muls

        # mean over bs*C elements, folded with balance_param * loss_weight
        cls_scale = BALANCE_PARAM * LOSS_WEIGHT / float(num_cls_el)
        cls = jnp.sum(jnp.sum(loss, axis=1, keepdims=True),
                      axis=0, keepdims=True) * cls_scale                  # (1, 1)

        sim_ref[...] = sim
        losses_ref[...] = sim + cls                      # losses = sim + 1 * cls


# ---------------------------------------------------------------------------
# Wrapper: single fused pallas_call with in-kernel row gathers.
# ---------------------------------------------------------------------------
def fused_sentence_losses(pred_row_idx, tgt_row_idx, feats_flat, embeds_flat,
                          pred_topic, tgt_topic, freq_inv, init_bias):
    K = int(pred_row_idx.shape[0])
    D = feats_flat.shape[-1]
    bs, C = pred_topic.shape

    kernel = functools.partial(_fused_loss_kernel, k_valid=K, num_cls_el=bs * C)

    losses, sim = pl.pallas_call(
        kernel,
        out_shape=(jax.ShapeDtypeStruct((1, 1), jnp.float32),
                   jax.ShapeDtypeStruct((1, 1), jnp.float32)),
        grid_spec=pltpu.PrefetchScalarGridSpec(
            num_scalar_prefetch=2,
            grid=(K,),
            in_specs=[
                # gathered matched-prediction row / target-sentence row
                pl.BlockSpec((1, 1, D), lambda i, pidx, tidx: (pidx[i], 0, 0)),
                pl.BlockSpec((1, 1, D), lambda i, pidx, tidx: (tidx[i], 0, 0)),
                # resident class blocks, full (unpadded) lane extent
                # TODO(synk): pipeline_mode=pl.Buffered(1) would halve their VMEM
                # footprint for large C (constant index_map); default kept here.
                pl.BlockSpec((bs, C), lambda i, pidx, tidx: (0, 0)),
                pl.BlockSpec((bs, C), lambda i, pidx, tidx: (0, 0)),
                pl.BlockSpec((1, C), lambda i, pidx, tidx: (0, 0)),
                pl.BlockSpec((1, C), lambda i, pidx, tidx: (0, 0)),
            ],
            out_specs=(
                pl.BlockSpec((1, 1), lambda i, pidx, tidx: (0, 0)),
                pl.BlockSpec((1, 1), lambda i, pidx, tidx: (0, 0)),
            ),
            scratch_shapes=[pltpu.VMEM((1, 1), jnp.float32)],
        ),
        # TODO(synk): on v7x a leading size-2 "parallel" axis over the matched rows
        # would occupy the second TensorCore; single "arbitrary" axis kept here.
        compiler_params=pltpu.CompilerParams(dimension_semantics=("arbitrary",)),
    )(pred_row_idx, tgt_row_idx, feats_flat, embeds_flat,
      pred_topic, tgt_topic, freq_inv, init_bias)
    return losses[0, 0], sim[0, 0]


# ---------------------------------------------------------------------------
# Module
# ---------------------------------------------------------------------------
class SentenceCriterion:
    def __init__(self, num_classes):
        # TODO(synk): ResampleLoss normally loads dataset class_freq / train_num
        # from disk; synthesized deterministically here.
        class_freq = (jnp.arange(num_classes, dtype=jnp.float32) + 1.0) * 5.0
        train_num = 20.0 * float(num_classes)
        self.freq_inv = (1.0 / class_freq)[None, :]                       # (1, C)
        self.init_bias = (-jnp.log(train_num / class_freq - 1.0)
                          * INIT_BIAS_SCALE)[None, :]                     # (1, C)

    def __call__(self, sent_feats, sent_embeds, sent_num, pred_topic, idx, e_idx):
        bs, Q, D = sent_feats.shape
        _, S_max, _ = sent_embeds.shape

        # pred_feats = sent_feats[idx]  ->  flat row indices into [bs*Q, D]
        idx_b, idx_q = idx
        pred_row_idx = (idx_b.astype(jnp.int32) * Q + idx_q.astype(jnp.int32))

        # tgt_feats = cat([sent_embeds[i, :sent_num[i]]])  ->  flat rows of
        # [bs*S_max, D]; needs concrete Python ints in sent_num (not jit-traceable).
        tgt_rows = []
        for b, n in enumerate(sent_num):
            for s in range(int(n)):
                tgt_rows.append(b * S_max + s)
        tgt_row_idx = jnp.asarray(tgt_rows, dtype=jnp.int32)
        assert pred_row_idx.shape[0] == tgt_row_idx.shape[0]

        # tgt_topic = zeros_like(pred_topic); tgt_topic[e_idx] = 1   (tiny scatter)
        e_b, e_c = e_idx
        tgt_topic = jnp.zeros(pred_topic.shape, jnp.float32).at[e_b, e_c].set(1.0)

        # Keep native dtypes (no host f32 upcast / no padding); reshapes are free.
        feats_flat = sent_feats.reshape(bs * Q, 1, D)
        embeds_flat = sent_embeds.reshape(bs * S_max, 1, D)

        return fused_sentence_losses(pred_row_idx, tgt_row_idx, feats_flat,
                                     embeds_flat, pred_topic, tgt_topic,
                                     self.freq_inv, self.init_bias)


# ---------------------------------------------------------------------------
if __name__ == "__main__":
    bs, Q, D, S_max, C = 2, 8, 32, 4, 16

    key = jax.random.PRNGKey(0)
    k1, k2, k3 = jax.random.split(key, 3)
    sent_feats = jax.random.normal(k1, (bs, Q, D), dtype=jnp.float32)
    sent_embeds = jax.random.normal(k2, (bs, S_max, D), dtype=jnp.float32)
    pred_topic = jax.random.normal(k3, (bs, C), dtype=jnp.float32)

    sent_num = [3, 2]                                       # sum == K == 5
    idx = (jnp.array([0, 0, 0, 1, 1], dtype=jnp.int32),     # matched batch indices
           jnp.array([1, 3, 5, 0, 2], dtype=jnp.int32))     # matched query indices
    e_idx = (jnp.array([0, 0, 1], dtype=jnp.int32),         # positive-label batch idx
             jnp.array([2, 7, 5], dtype=jnp.int32))         # positive-label class idx

    criterion = SentenceCriterion(num_classes=C)
    losses, sim_loss = criterion(sent_feats, sent_embeds, sent_num,
                                 pred_topic, idx, e_idx)
    losses = jax.block_until_ready(losses)
    sim_loss = jax.block_until_ready(sim_loss)

    assert jnp.isfinite(losses) and jnp.isfinite(sim_loss)
    print("KERNEL_OK")
</pallas_src>

<mosaic_0001>
module attributes {stable_mosaic.version = 11 : i64} {
  func.func @_fused_loss_kernel(%arg0: i32, %arg1: memref<5xi32, #tpu.memory_space<smem>>, %arg2: memref<5xi32, #tpu.memory_space<smem>>, %arg3: memref<1x1x32xf32, #tpu.memory_space<vmem>>, %arg4: memref<1x1x32xf32, #tpu.memory_space<vmem>>, %arg5: memref<2x16xf32, #tpu.memory_space<vmem>>, %arg6: memref<2x16xf32, #tpu.memory_space<vmem>>, %arg7: memref<1x16xf32, #tpu.memory_space<vmem>>, %arg8: memref<1x16xf32, #tpu.memory_space<vmem>>, %arg9: memref<1x1xf32, #tpu.memory_space<vmem>>, %arg10: memref<1x1xf32, #tpu.memory_space<vmem>>, %arg11: memref<1x1xf32, #tpu.memory_space<vmem>>) attributes {dimension_semantics = [#tpu.dimension_semantics<arbitrary>], iteration_bounds = array<i64: 5>, scalar_prefetch = 2 : i64, scratch_operands = 1 : i64, tpu.core_type = #tpu.core_type<tc>, window_params = [{transform_indices = @transform_0, window_bounds = array<i64: 1, 1, 32>}, {transform_indices = @transform_1, window_bounds = array<i64: 1, 1, 32>}, {pipeline_mode = #tpu.pipeline_mode<synchronous>, transform_indices = @transform_2, window_bounds = array<i64: 2, 16>}, {pipeline_mode = #tpu.pipeline_mode<synchronous>, transform_indices = @transform_3, window_bounds = array<i64: 2, 16>}, {pipeline_mode = #tpu.pipeline_mode<synchronous>, transform_indices = @transform_4, window_bounds = array<i64: 1, 16>}, {pipeline_mode = #tpu.pipeline_mode<synchronous>, transform_indices = @transform_5, window_bounds = array<i64: 1, 16>}, {pipeline_mode = #tpu.pipeline_mode<synchronous>, transform_indices = @transform_6, window_bounds = array<i64: 1, 1>}, {pipeline_mode = #tpu.pipeline_mode<synchronous>, transform_indices = @transform_7, window_bounds = array<i64: 1, 1>}]} {
    %c0_i32 = arith.constant 0 : i32
    %0 = arith.cmpi eq, %arg0, %c0_i32 : i32
    %1 = arith.extui %0 : i1 to i32
    %c0_i32_0 = arith.constant 0 : i32
    %2 = arith.cmpi ne, %1, %c0_i32_0 : i32
    scf.if %2 {
      %cst_16 = arith.constant 0.000000e+00 : f32
      %32 = vector.broadcast %cst_16 : f32 to vector<1x1xf32>
      %c0_17 = arith.constant 0 : index
      %c0_18 = arith.constant 0 : index
      %33 = vector.load %arg11[%c0_17, %c0_18] : memref<1x1xf32, #tpu.memory_space<vmem>>, vector<1x1xf32>
      tpu.vector_store %arg11[%c0_17, %c0_18], %32 {strides = array<i32>} : memref<1x1xf32, #tpu.memory_space<vmem>>, vector<1x1xf32>,
    } else {
    }
    %c0 = arith.constant 0 : index
    %c0_1 = arith.constant 0 : index
    %c0_2 = arith.constant 0 : index
    %3 = vector.load %arg3[%c0, %c0_1, %c0_2] : memref<1x1x32xf32, #tpu.memory_space<vmem>>, vector<1x1x32xf32>
    %4 = vector.shape_cast %3 : vector<1x1x32xf32> to vector<1x32xf32>
    %c0_3 = arith.constant 0 : index
    %c0_4 = arith.constant 0 : index
    %c0_5 = arith.constant 0 : index
    %5 = vector.load %arg4[%c0_3, %c0_4, %c0_5] : memref<1x1x32xf32, #tpu.memory_space<vmem>>, vector<1x1x32xf32>
    %6 = vector.shape_cast %5 : vector<1x1x32xf32> to vector<1x32xf32>
    %7 = arith.mulf %4, %6 : vector<1x32xf32>
    %cst = arith.constant dense<0.000000e+00> : vector<1xf32>
    %8 = vector.multi_reduction <add>, %7, %cst [1] : vector<1x32xf32> to vector<1xf32>
    %9 = vector.shape_cast %8 : vector<1xf32> to vector<1x1xf32>
    %10 = arith.mulf %4, %4 : vector<1x32xf32>
    %cst_6 = arith.constant dense<0.000000e+00> : vector<1xf32>
    %11 = vector.multi_reduction <add>, %10, %cst_6 [1] : vector<1x32xf32> to vector<1xf32>
    %12 = vector.shape_cast %11 : vector<1xf32> to vector<1x1xf32>
    %cst_7 = arith.constant 9.99999996E-13 : f32
    %13 = vector.broadcast %cst_7 : f32 to vector<1x1xf32>
    %14 = arith.maximumf %12, %13 : vector<1x1xf32>
    %15 = arith.mulf %6, %6 : vector<1x32xf32>
    %cst_8 = arith.constant dense<0.000000e+00> : vector<1xf32>
    %16 = vector.multi_reduction <add>, %15, %cst_8 [1] : vector<1x32xf32> to vector<1xf32>
    %17 = vector.shape_cast %16 : vector<1xf32> to vector<1x1xf32>
    %cst_9 = arith.constant 9.99999996E-13 : f32
    %18 = vector.broadcast %cst_9 : f32 to vector<1x1xf32>
    %19 = arith.maximumf %17, %18 : vector<1x1xf32>
    %20 = math.rsqrt %14 : vector<1x1xf32>
    %21 = arith.mulf %9, %20 : vector<1x1xf32>
    %22 = math.rsqrt %19 : vector<1x1xf32>
    %23 = arith.mulf %21, %22 : vector<1x1xf32>
    %c0_10 = arith.constant 0 : index
    %c0_11 = arith.constant 0 : index
    %24 = vector.load %arg11[%c0_10, %c0_11] : memref<1x1xf32, #tpu.memory_space<vmem>>, vector<1x1xf32>
    %cst_12 = arith.constant 1.000000e+00 : f32
    %25 = vector.broadcast %cst_12 : f32 to vector<1x1xf32>
    %26 = arith.subf %25, %23 : vector<1x1xf32>
    %27 = arith.addf %24, %26 : vector<1x1xf32>
    %c0_13 = arith.constant 0 : index
    %c0_14 = arith.constant 0 : index
    %28 = vector.load %arg11[%c0_13, %c0_14] : memref<1x1xf32, #tpu.memory_space<vmem>>, vector<1x1xf32>
    tpu.vector_store %arg11[%c0_13, %c0_14], %27 {strides = array<i32>} : memref<1x1xf32, #tpu.memory_space<vmem>>, vector<1x1xf32>,
    %c4_i32 = arith.constant 4 : i32
    %29 = arith.cmpi eq, %arg0, %c4_i32 : i32
    %30 = arith.extui %29 : i1 to i32
    %c0_i32_15 = arith.constant 0 : i32
    %31 = arith.cmpi ne, %30, %c0_i32_15 : i32
    scf.if %31 {
      %c0_16 = arith.constant 0 : index
      %c0_17 = arith.constant 0 : index
      %32 = vector.load %arg11[%c0_16, %c0_17] : memref<1x1xf32, #tpu.memory_space<vmem>>, vector<1x1xf32>
      %cst_18 = arith.constant 2.000000e-01 : f32
      %33 = vector.broadcast %cst_18 : f32 to vector<1x1xf32>
      %34 = arith.mulf %32, %33 : vector<1x1xf32>
      %c0_19 = arith.constant 0 : index
      %c0_20 = arith.constant 0 : index
      %35 = vector.load %arg5[%c0_19, %c0_20] : memref<2x16xf32, #tpu.memory_space<vmem>>, vector<2x16xf32>
      %c0_21 = arith.constant 0 : index
      %c0_22 = arith.constant 0 : index
      %36 = vector.load %arg6[%c0_21, %c0_22] : memref<2x16xf32, #tpu.memory_space<vmem>>, vector<2x16xf32>
      %c0_23 = arith.constant 0 : index
      %c0_24 = arith.constant 0 : index
      %37 = vector.load %arg7[%c0_23, %c0_24] : memref<1x16xf32, #tpu.memory_space<vmem>>, vector<1x16xf32>
      %38 = vector.broadcast %37 : vector<1x16xf32> to vector<2x16xf32>
      %39 = arith.mulf %36, %38 : vector<2x16xf32>
      %cst_25 = arith.constant dense<0.000000e+00> : vector<2xf32>
      %40 = vector.multi_reduction <add>, %39, %cst_25 [1] : vector<2x16xf32> to vector<2xf32>
      %41 = vector.shape_cast %40 : vector<2xf32> to vector<2x1xf32>
      %cst_26 = arith.constant 9.99999996E-13 : f32
      %42 = vector.broadcast %cst_26 : f32 to vector<2x1xf32>
      %43 = arith.maximumf %41, %42 : vector<2x1xf32>
      %44 = tpu.reciprocal %43 {approx = true} : vector<2x1xf32> -> vector<2x1xf32>
      %45 = vector.broadcast %37 : vector<1x16xf32> to vector<2x16xf32>
      %46 = vector.broadcast %44 : vector<2x1xf32> to vector<2x16xf32>
      %47 = arith.mulf %45, %46 : vector<2x16xf32>
      %cst_27 = arith.constant 2.000000e-01 : f32
      %48 = vector.broadcast %cst_27 : f32 to vector<2x16xf32>
      %49 = arith.subf %47, %48 : vector<2x16xf32>
      %cst_28 = arith.constant 1.000000e+01 : f32
      %50 = vector.broadcast %cst_28 : f32 to vector<2x16xf32>
      %51 = arith.mulf %50, %49 : vector<2x16xf32>
      %52 = arith.negf %51 : vector<2x16xf32>
      %53 = math.exp %52 : vector<2x16xf32>
      %cst_29 = arith.constant 1.000000e+00 : f32
      %54 = vector.broadcast %cst_29 : f32 to vector<2x16xf32>
      %55 = arith.addf %54, %53 : vector<2x16xf32>
      %56 = arith.divf %54, %55 : vector<2x16xf32>
      %cst_30 = arith.constant 1.000000e-01 : f32
      %57 = vector.broadcast %cst_30 : f32 to vector<2x16xf32>
      %58 = arith.addf %56, %57 : vector<2x16xf32>
      %c0_31 = arith.constant 0 : index
      %c0_32 = arith.constant 0 : index
      %59 = vector.load %arg8[%c0_31, %c0_32] : memref<1x16xf32, #tpu.memory_space<vmem>>, vector<1x16xf32>
      %60 = vector.broadcast %59 : vector<1x16xf32> to vector<2x16xf32>
      %61 = arith.addf %35, %60 : vector<2x16xf32>
      %cst_33 = arith.constant 1.000000e+00 : f32
      %62 = vector.broadcast %cst_33 : f32 to vector<2x16xf32>
      %63 = arith.subf %62, %36 : vector<2x16xf32>
      %64 = arith.mulf %61, %63 : vector<2x16xf32>
      %cst_34 = arith.constant 2.000000e+00 : f32
      %65 = vector.broadcast %cst_34 : f32 to vector<2x16xf32>
      %66 = arith.mulf %64, %65 : vector<2x16xf32>
      %67 = arith.mulf %61, %36 : vector<2x16xf32>
      %68 = arith.addf %66, %67 : vector<2x16xf32>
      %cst_35 = arith.constant 5.000000e-01 : f32
      %69 = vector.broadcast %cst_35 : f32 to vector<2x16xf32>
      %70 = arith.mulf %58, %69 : vector<2x16xf32>
      %cst_36 = arith.constant 1.000000e+00 : f32
      %71 = vector.broadcast %cst_36 : f32 to vector<2x16xf32>
      %72 = arith.subf %71, %36 : vector<2x16xf32>
      %73 = arith.mulf %70, %72 : vector<2x16xf32>
      %74 = arith.mulf %58, %36 : vector<2x16xf32>
      %75 = arith.addf %73, %74 : vector<2x16xf32>
      %cst_37 = arith.constant 0.000000e+00 : f32
      %76 = vector.broadcast %cst_37 : f32 to vector<2x16xf32>
      %77 = arith.maximumf %68, %76 : vector<2x16xf32>
      %78 = arith.mulf %68, %36 : vector<2x16xf32>
      %79 = arith.subf %77, %78 : vector<2x16xf32>
      %80 = math.absf %68 : vector<2x16xf32>
      %cst_38 = arith.constant 0.000000e+00 : f32
      %81 = vector.broadcast %cst_38 : f32 to vector<2x16xf32>
      %82 = arith.subf %81, %80 : vector<2x16xf32>
      %83 = math.exp %82 : vector<2x16xf32>
      %cst_39 = arith.constant 1.000000e+00 : f32
      %84 = vector.broadcast %cst_39 : f32 to vector<2x16xf32>
      %85 = arith.addf %84, %83 : vector<2x16xf32>
      %86 = math.log %85 : vector<2x16xf32>
      %87 = arith.addf %79, %86 : vector<2x16xf32>
      %cst_40 = arith.constant 0.000000e+00 : f32
      %88 = vector.broadcast %cst_40 : f32 to vector<2x16xf32>
      %89 = arith.subf %88, %87 : vector<2x16xf32>
      %90 = math.exp %89 : vector<2x16xf32>
      %cst_41 = arith.constant 1.000000e+00 : f32
      %91 = vector.broadcast %cst_41 : f32 to vector<2x16xf32>
      %92 = arith.subf %91, %90 : vector<2x16xf32>
      %93 = arith.mulf %92, %92 : vector<2x16xf32>
      %94 = arith.mulf %75, %87 : vector<2x16xf32>
      %95 = arith.mulf %93, %94 : vector<2x16xf32>
      %cst_42 = arith.constant dense<0.000000e+00> : vector<2xf32>
      %96 = vector.multi_reduction <add>, %95, %cst_42 [1] : vector<2x16xf32> to vector<2xf32>
      %97 = vector.shape_cast %96 : vector<2xf32> to vector<2x1xf32>
      %cst_43 = arith.constant dense<0.000000e+00> : vector<1xf32>
      %98 = vector.multi_reduction <add>, %97, %cst_43 [0] : vector<2x1xf32> to vector<1xf32>
      %99 = vector.shape_cast %98 : vector<1xf32> to vector<1x1xf32>
      %cst_44 = arith.constant 1.250000e-01 : f32
      %100 = vector.broadcast %cst_44 : f32 to vector<1x1xf32>
      %101 = arith.mulf %99, %100 : vector<1x1xf32>
      %c0_45 = arith.constant 0 : index
      %c0_46 = arith.constant 0 : index
      %102 = vector.load %arg10[%c0_45, %c0_46] : memref<1x1xf32, #tpu.memory_space<vmem>>, vector<1x1xf32>
      tpu.vector_store %arg10[%c0_45, %c0_46], %34 {strides = array<i32>} : memref<1x1xf32, #tpu.memory_space<vmem>>, vector<1x1xf32>,
      %103 = arith.addf %34, %101 : vector<1x1xf32>
      %c0_47 = arith.constant 0 : index
      %c0_48 = arith.constant 0 : index
      %104 = vector.load %arg9[%c0_47, %c0_48] : memref<1x1xf32, #tpu.memory_space<vmem>>, vector<1x1xf32>
      tpu.vector_store %arg9[%c0_47, %c0_48], %103 {strides = array<i32>} : memref<1x1xf32, #tpu.memory_space<vmem>>, vector<1x1xf32>,
    } else {
    }
    return
  }
  func.func @transform_0(%arg0: i32, %arg1: memref<5xi32, #tpu.memory_space<smem>>, %arg2: memref<5xi32, #tpu.memory_space<smem>>) -> (i32, i32, i32) {
    %0 = arith.index_cast %arg0 : i32 to index
    %1 = memref.load %arg1[%0] : memref<5xi32, #tpu.memory_space<smem>>
    %c0_i32 = arith.constant 0 : i32
    %c0_i32_0 = arith.constant 0 : i32
    %c0_i32_1 = arith.constant 0 : i32
    return %1, %c0_i32, %c0_i32_0 : i32, i32, i32
  }
  func.func @transform_1(%arg0: i32, %arg1: memref<5xi32, #tpu.memory_space<smem>>, %arg2: memref<5xi32, #tpu.memory_space<smem>>) -> (i32, i32, i32) {
    %0 = arith.index_cast %arg0 : i32 to index
    %1 = memref.load %arg2[%0] : memref<5xi32, #tpu.memory_space<smem>>
    %c0_i32 = arith.constant 0 : i32
    %c0_i32_0 = arith.constant 0 : i32
    %c0_i32_1 = arith.constant 0 : i32
    return %1, %c0_i32, %c0_i32_0 : i32, i32, i32
  }
  func.func @transform_2(%arg0: i32, %arg1: memref<5xi32, #tpu.memory_space<smem>>, %arg2: memref<5xi32, #tpu.memory_space<smem>>) -> (i32, i32) {
    %c0_i32 = arith.constant 0 : i32
    %c0_i32_0 = arith.constant 0 : i32
    %c0_i32_1 = arith.constant 0 : i32
    return %c0_i32, %c0_i32_0 : i32, i32
  }
  func.func @transform_3(%arg0: i32, %arg1: memref<5xi32, #tpu.memory_space<smem>>, %arg2: memref<5xi32, #tpu.memory_space<smem>>) -> (i32, i32) {
    %c0_i32 = arith.constant 0 : i32
    %c0_i32_0 = arith.constant 0 : i32
    %c0_i32_1 = arith.constant 0 : i32
    return %c0_i32, %c0_i32_0 : i32, i32
  }
  func.func @transform_4(%arg0: i32, %arg1: memref<5xi32, #tpu.memory_space<smem>>, %arg2: memref<5xi32, #tpu.memory_space<smem>>) -> (i32, i32) {
    %c0_i32 = arith.constant 0 : i32
    %c0_i32_0 = arith.constant 0 : i32
    %c0_i32_1 = arith.constant 0 : i32
    return %c0_i32, %c0_i32_0 : i32, i32
  }
  func.func @transform_5(%arg0: i32, %arg1: memref<5xi32, #tpu.memory_space<smem>>, %arg2: memref<5xi32, #tpu.memory_space<smem>>) -> (i32, i32) {
    %c0_i32 = arith.constant 0 : i32
    %c0_i32_0 = arith.constant 0 : i32
    %c0_i32_1 = arith.constant 0 : i32
    return %c0_i32, %c0_i32_0 : i32, i32
  }
  func.func @transform_6(%arg0: i32, %arg1: memref<5xi32, #tpu.memory_space<smem>>, %arg2: memref<5xi32, #tpu.memory_space<smem>>) -> (i32, i32) {
    %c0_i32 = arith.constant 0 : i32
    %c0_i32_0 = arith.constant 0 : i32
    %c0_i32_1 = arith.constant 0 : i32
    return %c0_i32, %c0_i32_0 : i32, i32
  }
  func.func @transform_7(%arg0: i32, %arg1: memref<5xi32, #tpu.memory_space<smem>>, %arg2: memref<5xi32, #tpu.memory_space<smem>>) -> (i32, i32) {
    %c0_i32 = arith.constant 0 : i32
    %c0_i32_0 = arith.constant 0 : i32
    %c0_i32_1 = arith.constant 0 : i32
    return %c0_i32, %c0_i32_0 : i32, i32
  }
}

</mosaic_0001>

<bundles_post_ra>
// kernel: tpu_custom_call.1
= control target key start
LH: loop header
LB: loop body
LE: loop exit
PB: predicated region body
PF: predicated region fallthrough
CT: control target
= control target key end

     0   :  { %s913_s15 = smov [#allocation4]   ;;  %s914_s16 = smov [#allocation5]   ;;  %s1195_s0 = inlined_call_operand.hbm [shape: s32[5], index: 0, kind: input, shape index: {}]   ;;  %s1196_s2 = inlined_call_operand.hbm [shape: f32[16,1,32], index: 2, kind: input, shape index: {}]   ;;  %s1197_s3 = inlined_call_operand.hbm [shape: f32[8,1,32], index: 3, kind: input, shape index: {}]   ;;  %s1198_s4 = inlined_call_operand.vmem [shape: f32[2,16], index: 4, kind: input, shape index: {}]   ;;  %s1199_s5 = inlined_call_operand.vmem [shape: f32[2,16], index: 5, kind: input, shape index: {}]   ;;  %s1200_s6 = inlined_call_operand.vmem [shape: f32[1,16], index: 6, kind: input, shape index: {}]   ;;  %s1201_s7 = inlined_call_operand.vmem [shape: f32[1,16], index: 7, kind: input, shape index: {}]   ;;  %s1202_s8 = inlined_call_operand.hbm [shape: f32[1,1], index: 8, kind: output, shape index: {0}]   ;;  %s1203_s9 = inlined_call_operand.hbm [shape: f32[1,1], index: 9, kind: output, shape index: {1}]   ;;  %s1204_s1 = inlined_call_operand.hbm [shape: s32[5], index: 1, kind: input, shape index: {}]  }
   0x1   :  { %1207 = sst [smem:[#allocation25_spill]] %s1202_s8  ;;  %s16_s11 = sshll.u32 %s1195_s0, 4  ;;  %s17_s11 = int_to_ptr.hbm [resolvable:$true] %s16_s11 }
   0x2   :  { %1208 = sst [smem:[#allocation26_spill]] %s1203_s9  ;;  %s21_s14 = sshll.u32 %s1204_s1, 4  ;;  %s22_s14 = int_to_ptr.hbm [resolvable:$true] %s21_s14 }
   0x3   :  { %19 = dma.hbm_to_smem %s17_s11, 16, %s913_s15, [#allocation3] }
   0x4   :  { %24 = dma.hbm_to_smem %s22_s14, 16, %s914_s16, [#allocation3] }
   0x5   :  { %867 = dma.done.wait [#allocation3], 32 }
   0x6   :  { %868 = vsyncadd [#allocation3], 4294967264 }
   0x7   :  { %27 = sfence }
   0x8   :  { %28 = vsyncpa [#allocation7], 0 }
   0x9   :  { %30 = vsyncpa [#allocation7 + $0x1], 0 }
   0xa   :  { %31 = vsyncpa [#allocation10], 0 }
   0xb   :  { %33 = vsyncpa [#allocation10 + $0x1], 0 }
   0xc   :  { %34 = vsyncpa [#allocation8], 0 }
   0xd   :  { %35 = vsyncpa [#allocation13], 0  ;;  %s974_s0 = smov 0   ;;  %s976_s17 = smov 0  }
   0xe   :  { %s978_s1 = smov 0   ;;  %s980_s18 = smov 0  }
   0xf   :  { %s982_s19 = smov 0   ;;  %s984_s20 = smov 0  }
  0x10   :  { %s986_s21 = smov 0  }
  0x11 LB: > { %1209 = sst [smem:[#allocation23_spill]] %s907_s20  ;;  %s1008_s22 = sadd.s32 1, %s911_s21   ;;  %s911_s21 = sphi %s986_s21, %s1230_s21   ;;  %s907_s20 = sphi %s984_s20, %s1224_s20   ;;  %s903_s19 = sphi %s982_s19, %s1229_s19   ;;  %s899_s18 = sphi %s980_s18, %s1228_s18   ;;  %s895_s1 = sphi %s978_s1, %s1227_s1   ;;  %s891_s17 = sphi %s976_s17, %s1226_s17   ;;  %s887_s0 = sphi %s974_s0, %s1225_s0  }
  0x12   : > { %s1011_s23 = sadd.s32 4294967295, %s911_s21   ;;  %s45_s24 = sld [smem:[#allocation4 + %s911_s21]] }
  0x13   : > { %s46_s25 = sld [smem:[#allocation4 + %s1008_s22]]  ;;  %p57_p0 = scmp.ne.s32.totalorder %s907_s20, %s903_s19 }
  0x14   : > { %p58_p1 = scmp.eq.s32.totalorder %s911_s21, 0  ;;  %p63_p2 = scmp.ne.s32.totalorder %s903_s19, %s899_s18 }
  0x15   : > { %p64_p3 = scmp.eq.s32.totalorder %s1011_s23, 0  ;;  %s50_s26 = sadd.s32 1, %s907_s20 }
  0x16   : > { %p1023_p4 = por %p58_p1, %p57_p0  ;;  %s253_s29 = sand.u32 1, %s907_s20  }
  0x17   : > { %p1029_p5 = por %p64_p3, %p63_p2  ;;  %p1206_p6 = scmp.lt.s32.totalorder %s911_s21, 5 }
  0x18   : > { %s256_s10 = scalar_lea.vmem [#allocation6], %s253_s29  ;;  %p577_p9 = scmp.ge.s32.totalorder %s911_s21, 1 }
  0x19   : > { %s47_s30 = ssub.s32 %s45_s24, %s46_s25  ;;  %s264_s11 = sshll.u32 %s256_s10, 4  ;;  %s265_s11 = int_to_ptr.vmem [resolvable:$true] %s264_s11 }
  0x1a   : > { %p48_p7 = scmp.eq.s32.totalorder %s47_s30, 0  ;;  %p1051_p8 = pnand %p1206_p6, %p1023_p4 }
  0x1b   : > { %s588_s12 = scalar_select %p1023_p4, [#allocation4], [#allocation14] }
  0x1c   : > { %s1038_s13 = scalar_select %p48_p7, %s907_s20, %s50_s26  }
  0x1d   : > { %s589_s14 = scalar_select %p1023_p4, %s911_s21, 0 }
  0x1e   : > { %1212 = sst [smem:[#allocation24_spill]] %s1038_s13  ;;  %s1232_s12 = smov (!%p1206_p6, %s588_s12), [#allocation16] }
  0x1f   : > { %s1234_s14 = smov (!%p1206_p6, %s589_s14), 0  ;;  %p287_p10 = scmp.lt.s32.totalorder %s911_s21, 6 }
  0x20   : > { %s257_s16 = sld [smem:[%s1232_s12 + %s1234_s14]]  ;;  %p85_p12 = scmp.ne.s32.totalorder %s895_s1, %s891_s17 }
  0x21   : > { %p1057_p11 = pnand %p577_p9, %p287_p10  ;;  %s73_s24 = sld [smem:[#allocation5 + %s911_s21]] }
  0x22   : > { %s74_s27 = sld [smem:[#allocation5 + %s1008_s22]]  ;;  %s254_s13 = scalar_lea.sflag [#allocation7], %s253_s29 }
  0x23   : > { %p727_p2 = pneg %p1051_p8  ;;  %s730_s8 = scalar_lea.hbm %s1196_s2, 16 }
  0x26   : > { %s260_s30 = scalar_lea.hbm %s1196_s2, %s257_s16 }
  0x27   : > { %s262_s10 = sshll.u32 %s260_s30, 4  ;;  %s263_s10 = int_to_ptr.hbm [resolvable:$true] %s262_s10 }
  0x28   : > { %s723_s20 = sshra.s32 %s263_s10, 4  ;;  %s724_s20 = int_to_ptr.hbm [resolvable:$true] %s723_s20 }
  0x29   : > { %s725_s12 = scalar_lea.hbm %s724_s20, 1  ;;  %p731_p9 = scmp.lt.s32.totalorder %s724_s20, %s1196_s2 }
  0x2a   : > { %p726_p0 = scmp.ne.s32.totalorder %s724_s20, %s725_s12  ;;  %p732_p10 = scmp.lt.s32.totalorder %s730_s8, %s725_s12 }
  0x2c   : > { %p728_p4 = pnand %p727_p2, %p726_p0  ;;  %p733_p6 = por %p732_p10, %p731_p9 }
  0x2e   : > { %p729_p7 = pneg %p728_p4 }
  0x30   : > { %p734_p13 = pnand %p733_p6, %p729_p7 }
  0x32   : > { %737 = shalt.err (!%p734_p13)
}
  0x33   : > { %609 = dma.hbm_to_vmem [thread:$0]  (!%p1051_p8), %s263_s10, 16, %s265_s11, %s254_s13  }
  0x34   : > { %p87_p6 = por %p85_p12, %p58_p1  ;;  %p1215_p13 = scmp.ne.s32.totalorder %s891_s17, %s887_s0 }
  0x35   : > { %s75_s9 = ssub.s32 %s73_s24, %s74_s27  ;;  %s78_s20 = sadd.s32 1, %s895_s1 }
  0x36   : > { %p1090_p0 = por %p1215_p13, %p64_p3  ;;  %p76_p2 = scmp.eq.s32.totalorder %s75_s9, 0 }
  0x37   : > { %s271_s29 = sand.u32 1, %s895_s1   ;;  %p1217_p4 = scmp.lt.s32.totalorder %s911_s21, 5 }
  0x38   : > { %s591_s15 = scalar_select %p87_p6, [#allocation5], [#allocation15] }
  0x39   : > { %s1097_s26 = scalar_select %p76_p2, %s895_s1, %s78_s20  }
  0x3a   : > { %s592_s30 = scalar_select %p87_p6, %s911_s21, 0 }
  0x3b   : > { %s1236_s15 = smov (!%p1217_p4, %s591_s15), [#allocation17]  ;;  %p1218_p8 = pmov %p1217_p4 }
  0x3c   : > { %p1219_p7 = pmov %p1217_p4  ;;  %s274_s13 = scalar_lea.vmem [#allocation9], %s271_s29 }
  0x3d   : > { %s1238_s30 = smov (!%p1218_p8, %s592_s30), 0  ;;  %s282_s24 = sshll.u32 %s274_s13, 4  ;;  %s283_s24 = int_to_ptr.vmem [resolvable:$true] %s282_s24 }
  0x3e   : > { %p1106_p1 = pnand %p1219_p7, %p87_p6  ;;  %s275_s0 = sld [smem:[%s1236_s15 + %s1238_s30]] }
  0x3f   : > { %s272_s25 = scalar_lea.sflag [#allocation10], %s271_s29  ;;  %s760_s15 = scalar_lea.hbm %s1197_s3, 8 }
  0x40   : > { %p757_p12 = pneg %p1106_p1 }
  0x44   : > { %s278_s12 = scalar_lea.hbm %s1197_s3, %s275_s0 }
  0x45   : > { %s280_s14 = sshll.u32 %s278_s12, 4  ;;  %s281_s14 = int_to_ptr.hbm [resolvable:$true] %s280_s14 }
  0x46   : > { %s753_s16 = sshra.s32 %s281_s14, 4  ;;  %s754_s16 = int_to_ptr.hbm [resolvable:$true] %s753_s16 }
  0x47   : > { %s755_s9 = scalar_lea.hbm %s754_s16, 1  ;;  %p761_p6 = scmp.lt.s32.totalorder %s754_s16, %s1197_s3 }
  0x48   : > { %p756_p3 = scmp.ne.s32.totalorder %s754_s16, %s755_s9  ;;  %p762_p13 = scmp.lt.s32.totalorder %s760_s15, %s755_s9 }
  0x4a   : > { %p758_p9 = pnand %p757_p12, %p756_p3  ;;  %p763_p2 = por %p762_p13, %p761_p6 }
  0x4c   : > { %p759_p10 = pneg %p758_p9 }
  0x4e   : > { %p764_p4 = pnand %p763_p2, %p759_p10 }
  0x50   : > { %767 = shalt.err (!%p764_p4)
}
  0x51   : > { %614 = dma.hbm_to_vmem [thread:$0]  (!%p1106_p1), %s281_s14, 16, %s283_s24, %s272_s25  }
  0x52   : > { %291 = sbr.rel (%p1057_p11) target bundleno = 581 (0x245), region = 44  ;;  %s293_s29 = sand.u32 (!%p1057_p11), 1, %s903_s19  }
  0x53   : > { %s294_s0 = scalar_lea.sflag (!%p1057_p11), [#allocation7], %s293_s29  ;;  %s296_s27 = scalar_lea.vmem (!%p1057_p11), [#allocation6], %s293_s29 }
  0x57   : > { %870 = dma.done.wait (%p1029_p5), %s294_s0, 16  }
  0x58   : > { %872 = vsyncadd (%p1029_p5), %s294_s0, 4294967280  ;;  %s302_s10 = sand.u32 1, %s891_s17  }
  0x59   : > { %s303_s12 = scalar_lea.sflag [#allocation10], %s302_s10  ;;  %s305_s16 = scalar_lea.vmem [#allocation9], %s302_s10 }
  0x5a   : > { %874 = dma.done.wait (%p1090_p0), %s303_s12, 16  }
  0x5b   : > { %876 = vsyncadd (%p1090_p0), %s303_s12, 4294967280  ;;  %p578_p11 = scmp.ne.s32.totalorder %s1011_s23, 0 }
  0x5d   : > { %340 = sbr.rel (%p578_p11) target bundleno = 100 (0x64), region = 56 }
  0x62   : > { %vm341_vm0 = vcmask 0   ;;  %v915_v0 = vmov 0.0  }
  0x63   : > { %342 = vst.msk [vmem:[#allocation2] sm:$0x1] %vm341_vm0, %v915_v0 }
  0x64 PF: > { %v343_v1 = vld [vmem:[%s296_s27] sm:$0x1]  ;;  %vm346_vm1 = vcmask 253952   ;;  %vm385_vm8 = vcmask 0   ;;  %p579_p5 = scmp.ne.s32.totalorder %s1011_s23, 4 }
  0x65   : > { %v344_v2 = vld [vmem:[%s305_s16] sm:$0x1]  ;;  %v350_v3 = vmul.f32 %v343_v1, %v343_v1 }
  0x66   : > { %v345_v4 = vmul.f32 %v344_v2, %v343_v1  ;;  %v355_v7 = vmul.f32 %v344_v2, %v344_v2 }
  0x67   : > { %v351_v5 = vsel %vm346_vm1, %v350_v3, 0.0 }
  0x68   : > { %v347_v6 = vsel %vm346_vm1, %v345_v4, 0.0  ;;  %352 = vadd.xlane.f32.xlu0 %v351_v5  ;;  %v356_v8 = vsel %vm346_vm1, %v355_v7, 0.0 }
  0x69   : > { %348 = vadd.xlane.f32.xlu1 %v347_v6 }
  0x6a   : > { %v382_v30 = vld [vmem:[#allocation2] sm:$0x1] }
  0x70   : > { %357 = vadd.xlane.f32.xlu0 %v356_v8 }
  0xdb   : > { %v353_v9 = vpop.xlane.xlu0 %352 }
  0xdc   : > { %v354_v10 = vmax.f32 %v353_v9, 1e-12  ;;  %v349_v25 = vpop.xlane.xlu1 %348 }
  0xde   : > { %681 = vrsqrt.f32 %v354_v10  ;;  %vm366_vm3 = vweird.f32 %v354_v10 }
  0xe3   : > { %v358_v11 = vpop.xlane.xlu0 %357 }
  0xe4   : > { %v682_v12 = vpop.eup %681  ;;  %v359_v13 = vmax.f32 %v358_v11, 1e-12 }
  0xe5   : > { %v361_v14 = vmul.f32 %v682_v12, %v354_v10  ;;  %vm367_vm2 = vweird.f32 %v682_v12 }
  0xe6   : > { %683 = vrsqrt.f32 %v359_v13  ;;  %vm368_vm4 = vmor %vm366_vm3, %vm367_vm2  ;;  %vm377_vm6 = vweird.f32 %v359_v13 }
  0xe7   : > { %v362_v15 = vmul.f32 %v682_v12, %v361_v14 }
  0xe9   : > { %v363_v16 = vmul.f32 0.5, %v362_v15 }
  0xeb   : > { %v364_v17 = vsub.f32 1.5, %v363_v16 }
  0xec   : > { %v684_v18 = vpop.eup %683 }
  0xed   : > { %v372_v19 = vmul.f32 %v684_v18, %v359_v13  ;;  %v365_v21 = vmul.f32 %v682_v12, %v364_v17  ;;  %vm378_vm5 = vweird.f32 %v684_v18 }
  0xee   : > { %vm379_vm7 = vmor %vm377_vm6, %vm378_vm5 }
  0xef   : > { %v373_v20 = vmul.f32 %v684_v18, %v372_v19  ;;  %v369_v24 = vsel %vm368_vm4, %v682_v12, %v365_v21 }
  0xf0   : > { %v370_v27 = vmul.f32 %v369_v24, %v349_v25 }
  0xf1   : > { %v374_v22 = vmul.f32 0.5, %v373_v20 }
  0xf3   : > { %v375_v23 = vsub.f32 1.5, %v374_v22 }
  0xf5   : > { %v376_v26 = vmul.f32 %v684_v18, %v375_v23 }
  0xf7   : > { %v380_v28 = vsel %vm379_vm7, %v684_v18, %v376_v26 }
  0xf8   : > { %v381_v29 = vmul.f32 %v380_v28, %v370_v27 }
  0xfa   : > { %v383_v31 = vsub.f32 1.0, %v381_v29  ;;  %390 = sbr.rel (%p579_p5) target bundleno = 566 (0x236), region = 60 }
  0xfc   : > { %v384_v32 = vadd.f32 %v383_v31, %v382_v30 }
  0xfe   : > { %386 = vst.msk [vmem:[#allocation2] sm:$0x1] %vm385_vm8, %v384_v32 }
  0xff   : > { %v394_v33 = vld [vmem:[%s1199_s5] sm:$0x3]  ;;  %vm400_vm9 = vcmask 123904   ;;  %vm464_vm14 = vcmask 1041408  }
 0x100   : > { %v685_v34 = vld [vmem:[%s1200_s6] ss:$0 sm:$0xff]  ;;  %v434_v40 = vsub.f32 1.0, %v394_v33 }
 0x101   : > { %v399_v35 = vmul.f32 %v685_v34, %v394_v33  ;;  %v686_v37 = vld [vmem:[%s1201_s7] ss:$0 sm:$0xff] }
 0x102   : > { %v393_v38 = vld [vmem:[%s1198_s4] sm:$0x3] }
 0x103   : > { %v401_v36 = vsel %vm400_vm9, %v399_v35, 0.0  ;;  %v433_v39 = vadd.f32 %v686_v37, %v393_v38 }
 0x104   : > { %402 = vadd.xlane.f32.xlu0 %v401_v36 }
 0x105   : > { %v435_v41 = vmul.f32 %v434_v40, %v433_v39  ;;  %v437_v42 = vmul.f32 %v433_v39, %v394_v33  ;;  %v391_v24 = vld [vmem:[#allocation2] sm:$0x1] }
 0x106   : > { %v392_v25 = vmul.f32 0.2, %v391_v24 }
 0x107   : > { %v436_v43 = vmul.f32 2.0, %v435_v41 }
 0x108   : > { %473 = vst.msk [vmem:[#allocation12] sm:$0x1] %vm385_vm8, %v392_v25 }
 0x109   : > { %v438_v44 = vadd.f32 %v437_v42, %v436_v43 }
 0x10b   : > { %v446_v45 = vand.u32 2147483647, %v438_v44  ;;  %v443_v57 = vmax.f32 %v438_v44, 0.0  ;;  %v444_v58 = vmul.f32 %v438_v44, %v394_v33 }
 0x10d   : > { %v447_v46 = vsub.f32 0.0, %v446_v45  ;;  %v445_v60 = vsub.f32 %v443_v57, %v444_v58 }
 0x10f   : > { %v448_v47 = vmul.f32 1.442695, %v447_v46 }
 0x111   : > { %687 = vpow2.f32 %v448_v47 }
 0x117   : > { %v688_v50 = vpop.eup %687 }
 0x118   : > { %v450_v51 = vadd.f32 1.0, %v688_v50 }
 0x177   : > { %v403_v48 = vpop.xlane.xlu0 %402 }
 0x178   : > { %v404_v49 = vmax.f32 %v403_v48, 1e-12 }
 0x17a   : > { %689 = vrcp.f32 %v404_v49 }
 0x17b   : > { %691 = vlog2.f32 %v450_v51 }
 0x180   : > { %v690_v52 = vpop.eup %689 }
 0x181   : > { %v406_v53 = vmul.f32 %v690_v52, %v685_v34  ;;  %v692_v59 = vpop.eup %691 }
 0x182   : > { %v452_v61 = vmul.f32 0.6931472, %v692_v59 }
 0x183   : > { %v580_v54 = vadd.f32 -0.2, %v406_v53 }
 0x184   : > { %v453_v0 = vadd.f32 %v452_v61, %v445_v60 }
 0x185   : > { %v581_v55 = vmul.f32 -10.0, %v580_v54 }
 0x186   : > { %v454_v1 = vsub.f32 0.0, %v453_v0 }
 0x187   : > { %v410_v56 = vmul.f32 1.442695, %v581_v55 }
 0x188   : > { %v455_v3 = vmul.f32 1.442695, %v454_v1 }
 0x189   : > { %693 = vpow2.f32 %v410_v56 }
 0x18f   : > { %v694_v62 = vpop.eup %693 }
 0x190   : > { %v412_v63 = vadd.f32 1.0, %v694_v62 }
 0x192   : > { %695 = vrcp.f32 %v412_v63  ;;  %v424_v6 = vand.u32 2147483648, %v412_v63  ;;  %v422_v8 = vand.u32 2147483647, %v412_v63  ;;  %vm418_vm11 = vweird.f32 %v412_v63 }
 0x193   : > { %697 = vpow2.f32 %v455_v3 }
 0x194   : > { %v425_v10 = vor.u32 1.1754944e-38, %v424_v6  ;;  %vm423_vm13 = vcmp.eq.f32.partialorder %v422_v8, 8.507059e+37 }
 0x198   : > { %v696_v2 = vpop.eup %695 }
 0x199   : > { %v414_v4 = vmul.f32 %v696_v2, %v412_v63  ;;  %vm419_vm10 = vweird.f32 %v696_v2  ;;  %v698_v12 = vpop.eup %697 }
 0x19a   : > { %vm420_vm12 = vmor %vm418_vm11, %vm419_vm10  ;;  %v457_v16 = vsub.f32 1.0, %v698_v12 }
 0x19b   : > { %v415_v5 = vsub.f32 1.0, %v414_v4 }
 0x19c   : > { %v458_v20 = vmul.f32 %v457_v16, %v457_v16 }
 0x19d   : > { %v416_v7 = vmul.f32 %v696_v2, %v415_v5 }
 0x19f   : > { %v417_v9 = vadd.f32 %v696_v2, %v416_v7 }
 0x1a1   : > { %v421_v11 = vsel %vm420_vm12, %v696_v2, %v417_v9 }
 0x1a2   : > { %v426_v13 = vsel %vm423_vm13, %v425_v10, %v421_v11 }
 0x1a3   : > { %v428_v14 = vadd.f32 0.1, %v426_v13 }
 0x1a5   : > { %v439_v15 = vmul.f32 0.5, %v428_v14  ;;  %v441_v18 = vmul.f32 %v428_v14, %v394_v33 }
 0x1a7   : > { %v440_v17 = vmul.f32 %v439_v15, %v434_v40 }
 0x1a9   : > { %v442_v19 = vadd.f32 %v441_v18, %v440_v17 }
 0x1ab   : > { %v459_v21 = vmul.f32 %v453_v0, %v442_v19 }
 0x1ad   : > { %v460_v22 = vmul.f32 %v459_v21, %v458_v20 }
 0x1af   : > { %v461_v23 = vsel %vm400_vm9, %v460_v22, 0.0 }
 0x1b0   : > { %462 = vadd.xlane.f32.xlu0 %v461_v23 }
 0x223   : > { %v463_v26 = vpop.xlane.xlu0 %462 }
 0x224   : > { %v465_v27 = vsel %vm464_vm14, %v463_v26, 0.0 }
 0x225   : > { %v466_v28 = vrot.slane %v465_v27, 4 }
 0x227   : > { %v467_v29 = vadd.f32 %v466_v28, %v465_v27 }
 0x229   : > { %v468_v30 = vrot.slane %v467_v29, 2 }
 0x22b   : > { %v469_v31 = vadd.f32 %v468_v30, %v467_v29 }
 0x22d   : > { %v470_v32 = vrot.slane %v469_v31, 1 }
 0x22f   : > { %v471_v33 = vadd.f32 %v470_v32, %v469_v31 }
 0x231   : > { %v472_v34 = vmul.f32 0.125, %v471_v33 }
 0x233   : > { %v474_v35 = vadd.f32 %v472_v34, %v392_v25 }
 0x235   : > { %475 = vst.msk [vmem:[#allocation11] sm:$0x1] %vm385_vm8, %v474_v35 }
 0x236 PF: > { %p616_p0 = scmp.eq.s32.totalorder %s1011_s23, 4  ;;  %s916_s21 = smov [#allocation11]  }
 0x237   : > { %s482_s20 = sshll.u32 %s916_s21, 4  ;;  %s1221_s13 = sld [smem:[#allocation25_spill]]  ;;  %s483_s20 = int_to_ptr.vmem [resolvable:$true] %s482_s20 }
 0x238   : > { %s1222_s10 = sld [smem:[#allocation26_spill]]  ;;  %s917_s16 = smov [#allocation12]  }
 0x239   : > { %s494_s28 = sshll.u32 %s917_s16, 4  ;;  %s495_s28 = int_to_ptr.vmem [resolvable:$true] %s494_s28 }
 0x23d   : > { %s484_s29 = sshll.u32 %s1221_s13, 4  ;;  %s485_s29 = int_to_ptr.hbm [resolvable:$true] %s484_s29 }
 0x23e   : > { %597 = dma.vmem_to_hbm [thread:$0]  (%p616_p0), %s483_s20, 16, %s485_s29, [#allocation8]  }
 0x23f   : > { %s496_s12 = sshll.u32 %s1222_s10, 4  ;;  %s497_s12 = int_to_ptr.hbm [resolvable:$true] %s496_s12 }
 0x240   : > { %599 = dma.vmem_to_hbm [thread:$0]  (%p616_p0), %s495_s28, 16, %s497_s12, [#allocation13]  }
 0x241   : > { %878 = dma.done.wait (%p616_p0), [#allocation8], 16  }
 0x242   : > { %880 = vsyncadd (%p616_p0), [#allocation8], 4294967280 }
 0x243   : > { %882 = dma.done.wait (%p616_p0), [#allocation13], 16  }
 0x244   : > { %884 = vsyncadd (%p616_p0), [#allocation13], 4294967280 }
 0x245 PF: > { %s1223_s8 = sld [smem:[#allocation23_spill]]  ;;  %p38_p8 = scmp.ge.s32.totalorder %s1008_s22, 7  }
 0x246   : > { %s1224_s20 = sld [smem:[#allocation24_spill]]  ;;  %s1225_s0 = smov %s891_s17 }
 0x247   : > { %s1226_s17 = smov %s895_s1  ;;  %s1227_s1 = smov %s1097_s26 }
 0x248   : > { %s1228_s18 = smov %s903_s19  ;;  %s1230_s21 = smov %s1008_s22 }
 0x249   :  { %40 = sbr.rel (!%p38_p8) target bundleno = 17 (0x11), region = 110 }
 0x24b   : > { %s1229_s19 = smov %s1223_s8 }
 0x24e   :  { %515 = vsyncpa [#allocation7], 1 }
 0x24f   :  { %517 = vsyncpa [#allocation7 + $0x1], 1 }
 0x250   :  { %518 = vsyncpa [#allocation10], 1 }
 0x251   :  { %520 = vsyncpa [#allocation10 + $0x1], 1 }
 0x252   :  { %521 = vsyncpa [#allocation8], 1 }
 0x253   :  { %523 = vsyncpa [#allocation8 + $0x1], 1 }
 0x254   :  { %524 = vsyncpa [#allocation13], 1 }

</bundles_post_ra>
